<compile_context>
chip_gen: v5e
topology: v5e:2x2
jax: 0.10.0
libtpu: 0.0.40
codegen_flags: <defaults>
</compile_context>

<pallas_src>
import functools

import jax
import jax.numpy as jnp
from jax.experimental import pallas as pl
from jax.experimental.pallas import tpu as pltpu


def _round_up(n, m):
    return ((n + m - 1) // m) * m


def _fused_masked_mlp_kernel(x_ref, w_ref, b_ref, m_ref, o_ref, *, num_layers):
    """One grid step = one tile of tm rows of the flattened (B*S, H) activations.

    x_ref : VMEM (tm, H)     f32   activation tile
    w_ref : VMEM (L, H, H)   bf16  stacked weights (grid-invariant block)
    b_ref : VMEM (L, 1, H)   f32   stacked biases  (grid-invariant block)
    m_ref : VMEM (tm, 1)     f32   per-row validity mask (1.0 keep / 0.0 drop)
    o_ref : VMEM (tm, H)     f32
    """
    h = x_ref[...]                                         # (tm, H) f32
    for l in range(num_layers):                            # static unroll
        y = jnp.dot(h.astype(jnp.bfloat16), w_ref[l],
                    preferred_element_type=jnp.float32)    # bf16 MXU, f32 acc
        h = jnp.maximum(y + b_ref[l], 0.0)                 # f32 bias + ReLU
    # Intermediate length-masking dropped on purpose: all ops are per-row, so
    # re-zeroing padded rows once at the end is identical to per-layer masking.
    o_ref[...] = (h * m_ref[...]).astype(o_ref.dtype)


@functools.partial(jax.jit, static_argnames=("tm_target",))
def fused_masked_mlp(x, sample_lengths, weights_bf16, biases_f32, *, tm_target=256):
    """Chained relu(x @ W_l + b_l) with time-steps >= sample_lengths[b] zeroed.

    x              : (B, S, H) float32
    sample_lengths : (B,)      int32
    weights_bf16   : (L, H, H) bfloat16
    biases_f32     : (L, 1, H) float32
    """
    B, S, H = x.shape
    L = weights_bf16.shape[0]
    M = B * S

    # Per-row validity (O(M) elems, trivially cheap) -> (M, 1) column mask.
    valid = jnp.arange(S, dtype=jnp.int32)[None, :] < sample_lengths[:, None]
    mask = valid.reshape(M, 1).astype(jnp.float32)

    x2 = x.reshape(M, H)

    # M tile: multiple of 8 sublanes, capped by tm_target and a VMEM budget
    # (double-buffered x + out tiles must fit comfortably even on v7x 64 MiB).
    vmem_budget = 16 * 1024 * 1024                     # activations' share
    tm_vmem_cap = max(8, (vmem_budget // (2 * 2 * H * 4)) // 8 * 8)
    tm = max(8, min(tm_target, _round_up(M, 8), tm_vmem_cap))
    m_pad = _round_up(M, tm)
    if m_pad != M:
        x2 = jnp.pad(x2, ((0, m_pad - M), (0, 0)))
        mask = jnp.pad(mask, ((0, m_pad - M), (0, 0)))  # padded rows -> masked

    grid = (pl.cdiv(m_pad, tm),)
    kernel = functools.partial(_fused_masked_mlp_kernel, num_layers=L)

    out = pl.pallas_call(
        kernel,
        out_shape=jax.ShapeDtypeStruct((m_pad, H), x.dtype),
        grid_spec=pltpu.PrefetchScalarGridSpec(
            num_scalar_prefetch=0,
            grid=grid,
            in_specs=[
                pl.BlockSpec((tm, H), lambda i: (i, 0)),
                # Weights / biases are grid-invariant (same block every step,
                # so they are fetched once and stay resident in VMEM).
                # TODO(synk): for very large H on v7x (64 MiB VMEM), add K/N
                # grid axes + f32 VMEM accumulator instead of whole-(H,H) blocks.
                pl.BlockSpec((L, H, H), lambda i: (0, 0, 0)),
                pl.BlockSpec((L, 1, H), lambda i: (0, 0, 0)),
                pl.BlockSpec((tm, 1), lambda i: (i, 0)),
            ],
            out_specs=pl.BlockSpec((tm, H), lambda i: (i, 0)),
        ),
        compiler_params=pltpu.CompilerParams(
            dimension_semantics=("parallel",),          # M tiles shard across TCs
            vmem_limit_bytes=32 * 1024 * 1024,
        ),
    )(x2, weights_bf16, biases_f32, mask)

    return out[:M].reshape(B, S, H)


class MaskedLinearReLU:
    """Concrete submodule: relu(x @ W + b), length-masked."""

    def __init__(self, key, hidden):
        kw, kb = jax.random.split(key)
        w = (jax.random.normal(kw, (hidden, hidden), jnp.float32)
             / jnp.sqrt(hidden).astype(jnp.float32))
        self.w = w.astype(jnp.bfloat16)                       # bf16 MXU weights
        self.b = (0.01 * jax.random.normal(kb, (hidden,), jnp.float32)
                  ).reshape(1, hidden)                        # f32 bias

    def __call__(self, x, sample_lengths):
        return fused_masked_mlp(x, sample_lengths, self.w[None], self.b[None])


class CustomWrapper:
    """JAX/Pallas equivalent of the PyTorch CustomWrapper(nn.Module).

    Generic sequential container over (x, sample_lengths) submodules.  When all
    submodules are same-width MaskedLinearReLU layers, the whole chain runs as
    ONE fused Pallas kernel (intermediate activations stay in VMEM); otherwise
    it falls back to chaining the submodules one by one.
    """

    def __init__(self, *args):
        self.content = list(args)

    def add(self, item):
        self.content.append(item)

    def forward(self, x, sample_lengths):
        fusible = (
            len(self.content) > 0
            and all(isinstance(m, MaskedLinearReLU) for m in self.content)
            and len({m.w.shape for m in self.content}) == 1
        )
        if fusible:
            weights = jnp.stack([m.w for m in self.content])   # (L, H, H) bf16
            biases = jnp.stack([m.b for m in self.content])    # (L, 1, H) f32
            return fused_masked_mlp(x, sample_lengths, weights, biases)
        for item in self.content:
            x = item(x, sample_lengths)
        return x

    __call__ = forward


def _reference(x, sample_lengths, layers):
    """Pure-JAX reference (same bf16-input / f32-accumulate math)."""
    B, S, H = x.shape
    pos = jnp.arange(S)[None, :, None]                        # (1, S, 1)
    mask = pos < sample_lengths[:, None, None]                # (B, S, 1)
    for layer in layers:
        y = jnp.einsum("bsh,hk->bsk", x.astype(jnp.bfloat16), layer.w,
                       preferred_element_type=jnp.float32) + layer.b
        y = jnp.maximum(y, 0.0)
        x = jnp.where(mask, y, 0.0)
    return x


if __name__ == "__main__":
    key = jax.random.PRNGKey(0)
    k_x, k_l1, k_l2 = jax.random.split(key, 3)

    B, S, H = 2, 8, 32
    x = jax.random.normal(k_x, (B, S, H), jnp.float32)
    sample_lengths = jnp.array([5, 8], dtype=jnp.int32)

    wrapper = CustomWrapper(MaskedLinearReLU(k_l1, H))
    wrapper.add(MaskedLinearReLU(k_l2, H))

    out = jax.block_until_ready(wrapper(x, sample_lengths))

    ref = _reference(x, sample_lengths, wrapper.content)
    assert out.shape == (B, S, H)
    assert jnp.allclose(out, ref, atol=2e-3, rtol=2e-3), "mismatch vs reference"

    print("KERNEL_OK")
</pallas_src>

<mosaic_0001>
module attributes {stable_mosaic.version = 11 : i64} {
  func.func @_fused_masked_mlp_kernel(%arg0: i32, %arg1: memref<16x32xf32, #tpu.memory_space<vmem>>, %arg2: memref<2x32x32xbf16, #tpu.memory_space<vmem>>, %arg3: memref<2x1x32xf32, #tpu.memory_space<vmem>>, %arg4: memref<16x1xf32, #tpu.memory_space<vmem>>, %arg5: memref<16x32xf32, #tpu.memory_space<vmem>>) attributes {dimension_semantics = [#tpu.dimension_semantics<parallel>], iteration_bounds = array<i64: 1>, scalar_prefetch = 0 : i64, scratch_operands = 0 : i64, tpu.core_type = #tpu.core_type<tc>, window_params = [{transform_indices = @transform_0, window_bounds = array<i64: 16, 32>}, {pipeline_mode = #tpu.pipeline_mode<synchronous>, transform_indices = @transform_1, window_bounds = array<i64: 2, 32, 32>}, {pipeline_mode = #tpu.pipeline_mode<synchronous>, transform_indices = @transform_2, window_bounds = array<i64: 2, 1, 32>}, {transform_indices = @transform_3, window_bounds = array<i64: 16, 1>}, {transform_indices = @transform_4, window_bounds = array<i64: 16, 32>}]} {
    %c0 = arith.constant 0 : index
    %c0_0 = arith.constant 0 : index
    %0 = vector.load %arg1[%c0, %c0_0] : memref<16x32xf32, #tpu.memory_space<vmem>>, vector<16x32xf32>
    %1 = arith.truncf %0 : vector<16x32xf32> to vector<16x32xbf16>
    %c0_1 = arith.constant 0 : index
    %c0_2 = arith.constant 0 : index
    %c0_3 = arith.constant 0 : index
    %2 = vector.load %arg2[%c0_1, %c0_2, %c0_3] : memref<2x32x32xbf16, #tpu.memory_space<vmem>>, vector<1x32x32xbf16>
    %3 = vector.shape_cast %2 : vector<1x32x32xbf16> to vector<32x32xbf16>
    %cst = arith.constant dense<0.000000e+00> : vector<16x32xf32>
    %4 = tpu.matmul %1, %3, %cst {dimension_numbers = #tpu.dot_dimension_numbers<[1], [0], [0], [1], [0, 0, 1, 1], [], []>} : vector<16x32xbf16>, vector<32x32xbf16>, vector<16x32xf32> -> vector<16x32xf32>
    %c0_4 = arith.constant 0 : index
    %c0_5 = arith.constant 0 : index
    %c0_6 = arith.constant 0 : index
    %5 = vector.load %arg3[%c0_4, %c0_5, %c0_6] : memref<2x1x32xf32, #tpu.memory_space<vmem>>, vector<1x1x32xf32>
    %6 = vector.shape_cast %5 : vector<1x1x32xf32> to vector<1x32xf32>
    %7 = vector.broadcast %6 : vector<1x32xf32> to vector<16x32xf32>
    %8 = arith.addf %4, %7 : vector<16x32xf32>
    %cst_7 = arith.constant 0.000000e+00 : f32
    %9 = vector.broadcast %cst_7 : f32 to vector<16x32xf32>
    %10 = arith.maximumf %8, %9 : vector<16x32xf32>
    %11 = arith.truncf %10 : vector<16x32xf32> to vector<16x32xbf16>
    %c1 = arith.constant 1 : index
    %c0_8 = arith.constant 0 : index
    %c0_9 = arith.constant 0 : index
    %12 = vector.load %arg2[%c1, %c0_8, %c0_9] : memref<2x32x32xbf16, #tpu.memory_space<vmem>>, vector<1x32x32xbf16>
    %13 = vector.shape_cast %12 : vector<1x32x32xbf16> to vector<32x32xbf16>
    %cst_10 = arith.constant dense<0.000000e+00> : vector<16x32xf32>
    %14 = tpu.matmul %11, %13, %cst_10 {dimension_numbers = #tpu.dot_dimension_numbers<[1], [0], [0], [1], [0, 0, 1, 1], [], []>} : vector<16x32xbf16>, vector<32x32xbf16>, vector<16x32xf32> -> vector<16x32xf32>
    %c1_11 = arith.constant 1 : index
    %c0_12 = arith.constant 0 : index
    %c0_13 = arith.constant 0 : index
    %15 = vector.load %arg3[%c1_11, %c0_12, %c0_13] : memref<2x1x32xf32, #tpu.memory_space<vmem>>, vector<1x1x32xf32>
    %16 = vector.shape_cast %15 : vector<1x1x32xf32> to vector<1x32xf32>
    %17 = vector.broadcast %16 : vector<1x32xf32> to vector<16x32xf32>
    %18 = arith.addf %14, %17 : vector<16x32xf32>
    %cst_14 = arith.constant 0.000000e+00 : f32
    %19 = vector.broadcast %cst_14 : f32 to vector<16x32xf32>
    %20 = arith.maximumf %18, %19 : vector<16x32xf32>
    %c0_15 = arith.constant 0 : index
    %c0_16 = arith.constant 0 : index
    %21 = vector.load %arg4[%c0_15, %c0_16] : memref<16x1xf32, #tpu.memory_space<vmem>>, vector<16x1xf32>
    %22 = vector.broadcast %21 : vector<16x1xf32> to vector<16x32xf32>
    %23 = arith.mulf %20, %22 : vector<16x32xf32>
    %c0_17 = arith.constant 0 : index
    %c0_18 = arith.constant 0 : index
    %24 = vector.load %arg5[%c0_17, %c0_18] : memref<16x32xf32, #tpu.memory_space<vmem>>, vector<16x32xf32>
    tpu.vector_store %arg5[%c0_17, %c0_18], %23 {strides = array<i32>} : memref<16x32xf32, #tpu.memory_space<vmem>>, vector<16x32xf32>,
    return
  }
  func.func @transform_0(%arg0: i32) -> (i32, i32) {
    %c0_i32 = arith.constant 0 : i32
    %c0_i32_0 = arith.constant 0 : i32
    return %arg0, %c0_i32 : i32, i32
  }
  func.func @transform_1(%arg0: i32) -> (i32, i32, i32) {
    %c0_i32 = arith.constant 0 : i32
    %c0_i32_0 = arith.constant 0 : i32
    %c0_i32_1 = arith.constant 0 : i32
    %c0_i32_2 = arith.constant 0 : i32
    return %c0_i32, %c0_i32_0, %c0_i32_1 : i32, i32, i32
  }
  func.func @transform_2(%arg0: i32) -> (i32, i32, i32) {
    %c0_i32 = arith.constant 0 : i32
    %c0_i32_0 = arith.constant 0 : i32
    %c0_i32_1 = arith.constant 0 : i32
    %c0_i32_2 = arith.constant 0 : i32
    return %c0_i32, %c0_i32_0, %c0_i32_1 : i32, i32, i32
  }
  func.func @transform_3(%arg0: i32) -> (i32, i32) {
    %c0_i32 = arith.constant 0 : i32
    %c0_i32_0 = arith.constant 0 : i32
    return %arg0, %c0_i32 : i32, i32
  }
  func.func @transform_4(%arg0: i32) -> (i32, i32) {
    %c0_i32 = arith.constant 0 : i32
    %c0_i32_0 = arith.constant 0 : i32
    return %arg0, %c0_i32 : i32, i32
  }
}

</mosaic_0001>

<bundles_post_ra>
// kernel: fused_masked_mlp.1
= control target key start
LH: loop header
LB: loop body
LE: loop exit
PB: predicated region body
PF: predicated region fallthrough
CT: control target
= control target key end

     0   :  { %9 = vsyncpa [#allocation3], 0  ;;  %s300_s0 = inlined_call_operand.vmem [shape: f32[16,32], index: 0, kind: input, shape index: {}]   ;;  %s301_s1 = inlined_call_operand.hbm [shape: bf16[2,32,32], index: 1, kind: input, shape index: {}]   ;;  %s302_s2 = inlined_call_operand.vmem [shape: f32[2,1,32], index: 2, kind: input, shape index: {}]   ;;  %s303_s3 = inlined_call_operand.vmem [shape: f32[16,1], index: 3, kind: input, shape index: {}]   ;;  %s304_s4 = inlined_call_operand.hbm [shape: f32[16,32], index: 4, kind: output, shape index: {}]  }
   0x1   :  { %10 = vsyncpa [#allocation4], 0  ;;  %s17_s17 = sshll.u32 %s301_s1, 4  ;;  %s240_s18 = smov [#allocation2]   ;;  %s18_s17 = int_to_ptr.hbm [resolvable:$true] %s17_s17 }
   0x2   :  { %s19_s19 = sshll.u32 %s240_s18, 4  ;;  %s241_s20 = smov 64   ;;  %s20_s19 = int_to_ptr.vmem [resolvable:$true] %s19_s19 }
   0x3   :  { %s242_s21 = smov 4  }
   0x4   :  { %25 = dma.hbm_to_vmem [thread:$0]  %s18_s17, 512, %s20_s19, [#allocation3], %s241_s20, %s241_s20, %s242_s21  }
   0x5   :  { %236 = dma.done.wait [#allocation3], 512  }
   0x6   :  { %237 = vsyncadd [#allocation3], 4294966784  ;;  %v175_v0 = vld [vmem:[#allocation2 + $0x8] sm:$0xff]  ;;  %v174_v1 = vld [vmem:[#allocation2] sm:$0xff]  ;;  %vm58_vm0 = vcmask 261120   ;;  %v243_v8 = vmov 0  }
   0x7   :  { %68 = vmatpush.bf16.msra.mxu0 %v175_v0  ;;  %v35_v2 = vld [vmem:[%s300_s0] sm:$0xff]  ;;  %v36_v3 = vld [vmem:[%s300_s0 + $0x8] sm:$0xff]  ;;  %v177_v5 = vld [vmem:[#allocation2 + $0x18] sm:$0xff]  ;;  %185 = vset.pattern.permute.xlu0 %v243_v8  ;;  %s142_s9 = sshll.u32 %s304_s4, 4  ;;  %s246_s10 = smov 8   ;;  %s143_s9 = int_to_ptr.hbm [resolvable:$true] %s142_s9 }
   0x8   :  { %v37_v4 = vpack.c.bf16 %v36_v3, %v35_v2  ;;  %110 = vmatpush.bf16.msra.mxu1 %v177_v5  ;;  %v176_v6 = vld [vmem:[#allocation2 + $0x10] sm:$0xff]  ;;  %v120_v7 = vld [vmem:[%s303_s3] sm:$0xff]  ;;  %v121_v9 = vld [vmem:[%s303_s3 + $0x8] sm:$0xff]  ;;  %s244_s3 = smov [#allocation5]  }
   0x9   :  { %124 = vperm.xlu0 %185, %v120_v7   ;;  %v186_v11 = vld [vmem:[%s302_s2] ss:$0 sm:$0xff]  ;;  %v187_v18 = vld [vmem:[%s302_s2 + $0x1] ss:$0 sm:$0xff]  ;;  %s140_s6 = sshll.u32 %s244_s3, 4  ;;  %s245_s2 = smov 128   ;;  %s141_s6 = int_to_ptr.vmem [resolvable:$true] %s140_s6 }
   0xb   :  { %69 = vmatpush.bf16.msra.mxu0 %v174_v1 }
   0xc   :  { %111 = vmatpush.bf16.msra.mxu1 %v176_v6 }
   0xe   :  { %163 = vmatmul.msk.bf16.vlgmr.msra.gmra.mxu0 %vm58_vm0, %v37_v4 }
  0x11   :  { %129 = vperm.xlu0 %185, %v121_v9  }
  0x7b   :  { %v125_v21 = vpop.permute.xlu0 %124 }
  0x83   :  { %v130_v27 = vpop.permute.xlu0 %129 }
  0x8b   :  { %v71_v10 = vpop.f32.mrf.mxu0 }
  0x8c   :  { %v72_v12 = vadd.f32 %v186_v11, %v71_v10 }
  0x8e   :  { %v76_v15 = vmax.f32 %v72_v12, 0.0 }
  0x93   :  { %v73_v13 = vpop.f32.mrf.mxu0 }
  0x94   :  { %v74_v14 = vadd.f32 %v186_v11, %v73_v13 }
  0x96   :  { %v77_v16 = vmax.f32 %v74_v14, 0.0 }
  0x98   :  { %v78_v17 = vpack.c.bf16 %v77_v16, %v76_v15 }
  0x9a   :  { %173 = vmatmul.msk.bf16.vlgmr.msra.gmra.mxu1 %vm58_vm0, %v78_v17 }
 0x117   :  { %v113_v19 = vpop.f32.mrf.mxu1 }
 0x118   :  { %v114_v20 = vadd.f32 %v187_v18, %v113_v19 }
 0x11a   :  { %v118_v22 = vmax.f32 %v114_v20, 0.0 }
 0x11c   :  { %v132_v23 = vmul.f32 %v125_v21, %v118_v22 }
 0x11e   :  { %134 = vst.msk [vmem:[#allocation5] sm:$0xff] %vm58_vm0, %v132_v23 }
 0x11f   :  { %v115_v24 = vpop.f32.mrf.mxu1 }
 0x120   :  { %v116_v25 = vadd.f32 %v187_v18, %v115_v24 }
 0x122   :  { %v119_v26 = vmax.f32 %v116_v25, 0.0 }
 0x124   :  { %v133_v28 = vmul.f32 %v130_v27, %v119_v26 }
 0x126   :  { %135 = vst.msk [vmem:[#allocation5 + $0x8] sm:$0xff] %vm58_vm0, %v133_v28 }
 0x127   :  { %148 = dma.vmem_to_hbm [thread:$0]  %s141_s6, 256, %s143_s9, [#allocation4], %s245_s2, %s245_s2, %s246_s10  }
 0x128   :  { %238 = dma.done.wait [#allocation4], 256  }
 0x129   :  { %239 = vsyncadd [#allocation4], 4294967040 }
 0x12a   :  { %153 = vsyncpa [#allocation3], 1 }
 0x12b   :  { %154 = vsyncpa [#allocation4], 1 }

</bundles_post_ra>
